<compile_context>
chip_gen: v7x
topology: tpu7x:2x2x1
jax: 0.10.0
libtpu: 0.0.40
codegen_flags: <defaults>
</compile_context>

<pallas_src>
import jax
import jax.numpy as jnp
from jax.experimental import pallas as pl
from jax.experimental.pallas import tpu as pltpu

M, K, N = 20, 100, 100        # input (M,K), weight (K,N), per-replica output (M,N)
REPS = 3                      # cat([v1, v2, v3], dim=1) -> (M, REPS*N)


def _mm_rep_kernel(x_ref, w_ref, o_ref):
    # Compute the matmul once; emit REPS full-tile stores, each at lane offset 0
    # (same layout as v), so every store is a natural, unmasked tile store.
    v = jnp.dot(
        x_ref[...],
        w_ref[...],
        preferred_element_type=jnp.float32,
        precision=jax.lax.Precision.HIGHEST,
    ).astype(o_ref.dtype)
    o_ref[0] = v
    o_ref[1] = v
    o_ref[2] = v


def mm_cat3(x, w):
    """Computes cat([x @ w, x @ w, x @ w], axis=1) -> (M, REPS*N).

    The Pallas kernel produces (REPS, M, N) with aligned full-tile stores; the
    (M, REPS*N) view required by torch.cat(dim=1) is assembled in the wrapper
    (cheap XLA transpose+reshape of ~24 KB).
    """
    bytes_accessed = (x.size + w.size + REPS * M * N) * 4  # fp32
    out3 = pl.pallas_call(
        _mm_rep_kernel,
        out_shape=jax.ShapeDtypeStruct((REPS, M, N), x.dtype),
        in_specs=[
            pl.BlockSpec(memory_space=pltpu.MemorySpace.VMEM),
            pl.BlockSpec(memory_space=pltpu.MemorySpace.VMEM),
        ],
        out_specs=pl.BlockSpec(memory_space=pltpu.MemorySpace.VMEM),
        cost_estimate=pl.CostEstimate(
            flops=2 * M * K * N,
            transcendentals=0,
            bytes_accessed=bytes_accessed,
        ),
    )(x, w)
    # (REPS, M, N) -> (M, REPS, N) -> (M, REPS*N): row m is [v[m], v[m], v[m]],
    # exactly torch.cat([v, v, v], dim=1).
    return out3.transpose(1, 0, 2).reshape(M, REPS * N)


if __name__ == "__main__":
    key = jax.random.PRNGKey(0)
    kx, kw = jax.random.split(key)

    # Deterministic stand-ins for self.input (randn(20,100)) and
    # self.layer.weight (Linear(100,100).weight, shape (100,100)).
    x = jax.random.normal(kx, (M, K), dtype=jnp.float32)
    w = jax.random.uniform(
        kw, (K, N), dtype=jnp.float32, minval=-0.1, maxval=0.1
    )

    out = mm_cat3(x, w)
    jax.block_until_ready(out)

    # Reference check against plain JAX (semantics of torch.mm + torch.cat dim=1).
    v_ref = jnp.dot(x, w, precision=jax.lax.Precision.HIGHEST)
    ref = jnp.concatenate([v_ref, v_ref, v_ref], axis=1)
    assert out.shape == (M, REPS * N)
    assert jnp.allclose(out, ref, atol=1e-4, rtol=1e-4)

    print("KERNEL_OK")
</pallas_src>

<mosaic_0001>
module attributes {stable_mosaic.version = 11 : i64} {
  func.func @_mm_rep_kernel(%arg0: memref<20x100xf32, #tpu.memory_space<vmem>>, %arg1: memref<100x100xf32, #tpu.memory_space<vmem>>, %arg2: memref<3x20x100xf32, #tpu.memory_space<vmem>>) attributes {dimension_semantics = [], scalar_prefetch = 0 : i64, scratch_operands = 0 : i64, tpu.core_type = #tpu.core_type<tc>} {
    %c0 = arith.constant 0 : index
    %c0_0 = arith.constant 0 : index
    %0 = vector.load %arg0[%c0, %c0_0] : memref<20x100xf32, #tpu.memory_space<vmem>>, vector<20x100xf32>
    %c0_1 = arith.constant 0 : index
    %c0_2 = arith.constant 0 : index
    %1 = vector.load %arg1[%c0_1, %c0_2] : memref<100x100xf32, #tpu.memory_space<vmem>>, vector<100x100xf32>
    %cst = arith.constant dense<0.000000e+00> : vector<20x100xf32>
    %2 = tpu.matmul %0, %1, %cst {dimension_numbers = #tpu.dot_dimension_numbers<[1], [0], [0], [1], [0, 0, 1, 1], [], []>, precision = #tpu.contract_precision<fp32>} : vector<20x100xf32>, vector<100x100xf32>, vector<20x100xf32> -> vector<20x100xf32>
    %c0_3 = arith.constant 0 : index
    %c0_4 = arith.constant 0 : index
    %c0_5 = arith.constant 0 : index
    %3 = vector.load %arg2[%c0_3, %c0_4, %c0_5] : memref<3x20x100xf32, #tpu.memory_space<vmem>>, vector<1x20x100xf32>
    %4 = vector.shape_cast %3 : vector<1x20x100xf32> to vector<20x100xf32>
    %5 = vector.shape_cast %2 : vector<20x100xf32> to vector<1x20x100xf32>
    tpu.vector_store %arg2[%c0_3, %c0_4, %c0_5], %5 {strides = array<i32>} : memref<3x20x100xf32, #tpu.memory_space<vmem>>, vector<1x20x100xf32>,
    %c1 = arith.constant 1 : index
    %c0_6 = arith.constant 0 : index
    %c0_7 = arith.constant 0 : index
    %6 = vector.load %arg2[%c1, %c0_6, %c0_7] : memref<3x20x100xf32, #tpu.memory_space<vmem>>, vector<1x20x100xf32>
    %7 = vector.shape_cast %6 : vector<1x20x100xf32> to vector<20x100xf32>
    %8 = vector.shape_cast %2 : vector<20x100xf32> to vector<1x20x100xf32>
    tpu.vector_store %arg2[%c1, %c0_6, %c0_7], %8 {strides = array<i32>} : memref<3x20x100xf32, #tpu.memory_space<vmem>>, vector<1x20x100xf32>,
    %c2 = arith.constant 2 : index
    %c0_8 = arith.constant 0 : index
    %c0_9 = arith.constant 0 : index
    %9 = vector.load %arg2[%c2, %c0_8, %c0_9] : memref<3x20x100xf32, #tpu.memory_space<vmem>>, vector<1x20x100xf32>
    %10 = vector.shape_cast %9 : vector<1x20x100xf32> to vector<20x100xf32>
    %11 = vector.shape_cast %2 : vector<20x100xf32> to vector<1x20x100xf32>
    tpu.vector_store %arg2[%c2, %c0_8, %c0_9], %11 {strides = array<i32>} : memref<3x20x100xf32, #tpu.memory_space<vmem>>, vector<1x20x100xf32>,
    return
  }
}

</mosaic_0001>

<bundles_post_ra>
// kernel: tpu_custom_call.1
= control target key start
LH: loop header
LB: loop body
LE: loop exit
PB: predicated region body
PF: predicated region fallthrough
CT: control target
= control target key end

     0   :  { %7 = vsyncpa [#allocation3], 0  ;;  %s1610_s0 = inlined_call_operand.hbm [shape: f32[20,100], index: 0, kind: input, shape index: {}]   ;;  %s1611_s1 = inlined_call_operand.hbm [shape: f32[100,100], index: 1, kind: input, shape index: {}]   ;;  %s1612_s2 = inlined_call_operand.hbm [shape: f32[3,20,100], index: 2, kind: output, shape index: {}]  }
   0x1   :  { %8 = vsyncpa [#allocation6], 0 }
   0x2   :  { %9 = vsyncpa [#allocation4], 0  ;;  %s1309_s9 = smov [#allocation2]   ;;  %s1237_s13 = scalar_lea.hbm %s1610_s0, 384 }
   0x3   :  { %s15_s10 = sshll.u32 %s1309_s9, 4  ;;  %p1238_p0 = scmp.ne.s32.totalorder %s1610_s0, %s1237_s13  ;;  %s16_s10 = int_to_ptr.vmem [resolvable:$true] %s15_s10 }
   0x4   :  { %p1241_p1 = scmp.lt.u32.totalorder %s1237_s13, %s1610_s0 }
   0x6   :  { %p1243_p2 = pnand %p1241_p1, %p1238_p0 }
   0x8   :  { %1246 = shalt.err (!%p1243_p2)
}
   0x9   :  { %s1247_s18 = scalar_lea.vmem %s16_s10, 384  ;;  %p1252_p4 = scmp.lt.s32.totalorder %s16_s10, %s16_s10 }
   0xa   :  { %p1248_p3 = scmp.ne.s32.totalorder %s16_s10, %s1247_s18  ;;  %p1253_p5 = scmp.lt.s32.totalorder %s1247_s18, %s1247_s18 }
   0xc   :  { %p1254_p6 = por %p1253_p5, %p1252_p4 }
   0xe   :  { %p1255_p7 = pnand %p1254_p6, %p1248_p3 }
  0x10   :  { %1258 = shalt.err (!%p1255_p7)
}
  0x11   :  { %s1310_s19 = smov 128   ;;  %s1311_s20 = smov 8  }
  0x12   :  { %21 = dma.hbm_to_vmem [thread:$0]  %s1610_s0, 384, %s16_s10, [#allocation3], %s1310_s19, %s1310_s19, %s1311_s20  }
  0x13   :  { %s1312_s23 = smov [#allocation5]   ;;  %s1259_s27 = scalar_lea.hbm %s1611_s1, 1664 }
  0x14   :  { %s27_s24 = sshll.u32 %s1312_s23, 4  ;;  %p1260_p8 = scmp.ne.s32.totalorder %s1611_s1, %s1259_s27  ;;  %s28_s24 = int_to_ptr.vmem [resolvable:$true] %s27_s24 }
  0x15   :  { %p1263_p9 = scmp.lt.u32.totalorder %s1259_s27, %s1611_s1 }
  0x17   :  { %p1265_p10 = pnand %p1263_p9, %p1260_p8 }
  0x19   :  { %1268 = shalt.err (!%p1265_p10)
}
  0x1a   :  { %s1269_s4 = scalar_lea.vmem %s28_s24, 1664  ;;  %p1274_p12 = scmp.lt.s32.totalorder %s28_s24, %s28_s24 }
  0x1b   :  { %p1270_p11 = scmp.ne.s32.totalorder %s28_s24, %s1269_s4  ;;  %p1275_p13 = scmp.lt.s32.totalorder %s1269_s4, %s1269_s4 }
  0x1d   :  { %p1276_p0 = por %p1275_p13, %p1274_p12 }
  0x1f   :  { %p1277_p1 = pnand %p1276_p0, %p1270_p11 }
  0x21   :  { %1280 = shalt.err (!%p1277_p1)
}
  0x22   :  { %33 = dma.hbm_to_vmem [thread:$0]  %s1611_s1, 1664, %s28_s24, [#allocation6], %s1310_s19, %s1310_s19, %s1311_s20  }
  0x23   :  { %1303 = dma.done.wait [#allocation3], 384  }
  0x24   :  { %1304 = vsyncadd [#allocation3], 4294966912 }
  0x25   :  { %1305 = dma.done.wait [#allocation6], 1664  }
  0x26   :  { %1306 = vsyncadd [#allocation6], 4294965632  ;;  %v1313_v0 = vmov 0.0|0.0   ;;  %vm1314_vm0 = vmmov 0   ;;  %v1315_v1 = vmov 0.0   ;;  %v43_v2 = vld [vmem:[#allocation5] sm:$0xff] }
  0x27   :  { %1094 = vmatprep.subr.bf16.mxu1 %v1313_v0  ;;  %1148 = vmatprep.subr.bf16.mxu0 %v1313_v0  ;;  %v44_v3 = vld [vmem:[#allocation5 + $0x8] sm:$0xff]  ;;  %v45_v4 = vld [vmem:[#allocation5 + $0x10] sm:$0xff]  ;;  %v71_v5 = vand.u32 4294901760, %v43_v2  ;;  %v46_v7 = vld [vmem:[#allocation5 + $0x18] sm:$0xff]  ;;  %vm56_vm1 = vcmask 818176   ;;  %vm66_vm2 = vcmask 1043456  }
  0x28   :  { %910 = vmatprep.mubr.msk.f32.mxu1 %vm1314_vm0, %v1315_v1  ;;  %1015 = vmatprep.mubr.msk.f32.mxu0 %vm1314_vm0, %v1315_v1  ;;  %v74_v6 = vand.u32 4294901760, %v44_v3  ;;  %v77_v8 = vand.u32 4294901760, %v45_v4  ;;  %v80_v9 = vand.u32 4294901760, %v46_v7  ;;  %v47_v10 = vld [vmem:[#allocation5 + $0x20] sm:$0xff]  ;;  %v48_v11 = vld [vmem:[#allocation5 + $0x28] sm:$0xff]  ;;  %v49_v16 = vld [vmem:[#allocation5 + $0x30] sm:$0xff] }
  0x29   :  { %v83_v14 = vand.u32 4294901760, %v47_v10  ;;  %v86_v15 = vand.u32 4294901760, %v48_v11  ;;  %v50_v17 = vld [vmem:[#allocation5 + $0x38] sm:$0xff]  ;;  %v40_v18 = vld [vmem:[#allocation2] sm:$0xff]  ;;  %v89_v20 = vand.u32 4294901760, %v49_v16  ;;  %v51_v23 = vld [vmem:[#allocation5 + $0x40] sm:$0xff]  ;;  %v1385_v26 = vsub.f32 %v43_v2, %v71_v5 }
  0x2a   :  { %v1368_v12 = vpack.c.bf16 %v74_v6, %v71_v5  ;;  %v1372_v13 = vpack.c.bf16 %v80_v9, %v77_v8  ;;  %v92_v21 = vand.u32 4294901760, %v50_v17  ;;  %v58_v22 = vsel %vm56_vm1, %v40_v18, 0  ;;  %v52_v24 = vld [vmem:[#allocation5 + $0x48] sm:$0xff]  ;;  %v1395_v31 = vld [vmem:[#allocation5 + $0x50] sm:$0xff]  ;;  %v1397_v32 = vld [vmem:[#allocation5 + $0x58] sm:$0xff]  ;;  %s1316_s1 = smov [#allocation7]  }
  0x2b   :  { %v1378_v19 = vpack.c.bf16 %v86_v15, %v83_v14  ;;  %v1383_v25 = vand.u32 4294901760, %v58_v22  ;;  %v1387_v27 = vsub.f32 %v44_v3, %v74_v6  ;;  %v95_v29 = vand.u32 4294901760, %v51_v23  ;;  %v41_v41 = vld [vmem:[#allocation2 + $0x8] sm:$0xff]  ;;  %v55_v44 = vld [vmem:[#allocation5 + $0x60] sm:$0xf]  ;;  %s775_s6 = sshll.u32 %s1316_s1, 4  ;;  %s776_s6 = int_to_ptr.vmem [resolvable:$true] %s775_s6 }
  0x2c   :  { %1096 = vmatpush3.bf16.msra.mxu1 %v1368_v12  ;;  %1150 = vmatpush3.bf16.msra.mxu0 %v1368_v12  ;;  %v1391_v28 = vpack.c.bf16 %v92_v21, %v89_v20  ;;  %v98_v30 = vand.u32 4294901760, %v52_v24  ;;  %v1399_v33 = vsub.f32 %v45_v4, %v77_v8  ;;  %v1404_v35 = vsub.f32 %v46_v7, %v80_v9  ;;  %v42_v45 = vld [vmem:[#allocation2 + $0x10] sm:$0xf]  ;;  %s1281_s7 = scalar_lea.vmem %s776_s6, 1152  ;;  %p1286_p3 = scmp.lt.s32.totalorder %s776_s6, %s776_s6 }
  0x2d   :  { %1097 = vmatprep.subr.bf16.mxu1 %v1313_v0  ;;  %1151 = vmatprep.subr.bf16.mxu0 %v1313_v0  ;;  %v1402_v34 = vsub.f32 %v58_v22, %v1383_v25  ;;  %v181_v36 = vand.u32 4294901760, %v1385_v26  ;;  %v188_v37 = vand.u32 4294901760, %v1387_v27  ;;  %v101_v39 = vand.u32 4294901760, %v1395_v31  ;;  %p1282_p2 = scmp.ne.s32.totalorder %s776_s6, %s1281_s7  ;;  %p1287_p4 = scmp.lt.s32.totalorder %s1281_s7, %s1281_s7 }
  0x2e   :  { %v1410_v38 = vpack.c.bf16 %v98_v30, %v95_v29  ;;  %v104_v40 = vand.u32 4294901760, %v1397_v32  ;;  %v1414_v42 = vsub.f32 %v47_v10, %v83_v14  ;;  %v1416_v43 = vsub.f32 %v48_v11, %v86_v15 }
  0x2f   :  { %v150_v46 = vand.u32 4294901760, %v1402_v34  ;;  %v195_v47 = vand.u32 4294901760, %v1399_v33  ;;  %v182_v48 = vsub.f32 %v1385_v26, %v181_v36  ;;  %v189_v49 = vsub.f32 %v1387_v27, %v188_v37  ;;  %p1288_p5 = por %p1287_p4, %p1286_p3 }
  0x30   :  { %1099 = vmatpush3.bf16.msra.mxu1 %v1372_v13  ;;  %1153 = vmatpush3.bf16.msra.mxu0 %v1372_v13  ;;  %v202_v50 = vand.u32 4294901760, %v1404_v35  ;;  %v61_v51 = vsel %vm56_vm1, %v41_v41, 0  ;;  %v1428_v52 = vpack.c.bf16 %v104_v40, %v101_v39  ;;  %v1430_v53 = vsel %vm66_vm2, %v55_v44, 0 }
  0x31   :  { %1100 = vmatprep.subr.bf16.mxu1 %v1313_v0  ;;  %1154 = vmatprep.subr.bf16.mxu0 %v1313_v0  ;;  %v1432_v54 = vand.u32 4294901760, %v61_v51  ;;  %v64_v55 = vsel %vm56_vm1, %v42_v45, 0  ;;  %v1435_v56 = vsub.f32 %v49_v16, %v89_v20  ;;  %v209_v57 = vand.u32 4294901760, %v1414_v42  ;;  %p1289_p6 = pnand %p1288_p5, %p1282_p2 }
  0x32   :  { %v216_v58 = vand.u32 4294901760, %v1416_v43  ;;  %v1441_v59 = vand.u32 4294901760, %v64_v55  ;;  %v1443_v60 = vsub.f32 %v50_v17, %v92_v21  ;;  %v151_v61 = vsub.f32 %v1402_v34, %v150_v46 }
  0x33   :  { %v196_v62 = vsub.f32 %v1399_v33, %v195_v47  ;;  %v1448_v63 = vsub.f32 %v61_v51, %v1432_v54  ;;  %v183_v2 = vand.u32 4294901760, %v182_v48  ;;  %v190_v3 = vand.u32 4294901760, %v189_v49 }
  0x34   :  { %1102 = vmatpush3.bf16.msra.mxu1 %v1378_v19  ;;  %1156 = vmatpush3.bf16.msra.mxu0 %v1378_v19  ;;  %v203_v4 = vsub.f32 %v1404_v35, %v202_v50  ;;  %v1452_v5 = vsub.f32 %v64_v55, %v1441_v59  ;;  %v1454_v6 = vsub.f32 %v51_v23, %v95_v29  ;;  %v1461_v8 = vand.u32 4294901760, %v1430_v53 }
  0x35   :  { %1103 = vmatprep.subr.bf16.mxu1 %v1313_v0  ;;  %1157 = vmatprep.subr.bf16.mxu0 %v1313_v0  ;;  %v1456_v7 = vsub.f32 %v52_v24, %v98_v30  ;;  %v160_v9 = vand.u32 4294901760, %v1448_v63  ;;  %v1167_v10 = vpack.c.bf16 %v188_v37, %v181_v36  ;;  %v210_v11 = vsub.f32 %v1414_v42, %v209_v57 }
  0x36   :  { %v217_v14 = vsub.f32 %v1416_v43, %v216_v58  ;;  %v152_v15 = vand.u32 4294901760, %v151_v61  ;;  %v223_v16 = vand.u32 4294901760, %v1435_v56  ;;  %v170_v18 = vand.u32 4294901760, %v1452_v5 }
  0x37   :  { %v161_v17 = vsub.f32 %v1448_v63, %v160_v9  ;;  %v1113_v20 = vpack.c.bf16 %v190_v3, %v183_v2  ;;  %v197_v21 = vand.u32 4294901760, %v196_v62  ;;  %v204_v22 = vand.u32 4294901760, %v203_v4 }
  0x38   :  { %1105 = vmatpush3.bf16.msra.mxu1 %v1391_v28  ;;  %1159 = vmatpush3.bf16.msra.mxu0 %v1391_v28  ;;  %v230_v23 = vand.u32 4294901760, %v1443_v60  ;;  %v1475_v24 = vsub.f32 %v1395_v31, %v101_v39  ;;  %v1478_v29 = vsub.f32 %v1397_v32, %v104_v40  ;;  %v211_v30 = vand.u32 4294901760, %v210_v11 }
  0x39   :  { %1106 = vmatprep.subr.bf16.mxu1 %v1313_v0  ;;  %1160 = vmatprep.subr.bf16.mxu0 %v1313_v0  ;;  %v218_v36 = vand.u32 4294901760, %v217_v14  ;;  %v224_v37 = vsub.f32 %v1435_v56, %v223_v16  ;;  %v237_v41 = vand.u32 4294901760, %v1454_v6  ;;  %v162_v44 = vand.u32 4294901760, %v161_v17 }
  0x3a   :  { %v171_v45 = vsub.f32 %v1452_v5, %v170_v18  ;;  %v1116_v31 = vpack.c.bf16 %v204_v22, %v197_v21  ;;  %v1170_v32 = vpack.c.bf16 %v202_v50, %v195_v47  ;;  %v231_v39 = vsub.f32 %v1443_v60, %v230_v23 }
  0x3b   :  { %v244_v40 = vand.u32 4294901760, %v1456_v7  ;;  %v1119_v48 = vpack.c.bf16 %v218_v36, %v211_v30  ;;  %v225_v49 = vand.u32 4294901760, %v224_v37  ;;  %v238_v51 = vsub.f32 %v1454_v6, %v237_v41 }
  0x3c   :  { %1108 = vmatpush3.bf16.msra.mxu1 %v1410_v38  ;;  %1162 = vmatpush3.bf16.msra.mxu0 %v1410_v38  ;;  %v172_v47 = vand.u32 4294901760, %v171_v45  ;;  %v232_v50 = vand.u32 4294901760, %v231_v39  ;;  %v1505_v61 = vsub.f32 %v1430_v53, %v1461_v8  ;;  %v1176_v62 = vpack.c.bf16 %v230_v23, %v223_v16 }
  0x3d   :  { %1109 = vmatprep.subr.bf16.mxu1 %v1313_v0  ;;  %1163 = vmatprep.subr.bf16.mxu0 %v1313_v0  ;;  %v245_v55 = vsub.f32 %v1456_v7, %v244_v40  ;;  %v239_v2 = vand.u32 4294901760, %v238_v51  ;;  %v1179_v53 = vpack.c.bf16 %v244_v40, %v237_v41  ;;  %v1131_v22 = vpack.c.bf16 %v1387_v27, %v1385_v26 }
  0x3e   :  { %v1122_v3 = vpack.c.bf16 %v232_v50, %v225_v49  ;;  %v265_v16 = vand.u32 4294901760, %v1505_v61  ;;  %v1134_v23 = vpack.c.bf16 %v1404_v35, %v1399_v33  ;;  %v1143_v26 = vpack.c.bf16 %v1456_v7, %v1454_v6 }
  0x3f   :  { %v246_v4 = vand.u32 4294901760, %v245_v55  ;;  %vm760_vm3 = vcmask 814080  }
  0x40   :  { %1111 = vmatpush3.bf16.msra.mxu1 %v1428_v52  ;;  %1165 = vmatpush3.bf16.msra.mxu0 %v1428_v52 }
  0x41   :  { %908 = vmatprep.subr.mxu1 %v1315_v1  ;;  %1013 = vmatprep.subr.mxu0 %v1315_v1  ;;  %v1125_v11 = vpack.c.bf16 %v246_v4, %v239_v2 }
  0x44   :  { %909 = vmatpush3.msra.mxu1 %v1461_v8  ;;  %1014 = vmatpush3.msra.mxu0 %v1461_v8 }
  0x45   :  { %1112 = vmatprep.subr.bf16.mxu1 %v1313_v0  ;;  %1166 = vmatprep.subr.bf16.mxu0 %v1313_v0 }
  0x46   :  { %911 = vmatmul.mubr.f32.vlgmr.msra.gmra.mrb[0].mxu1 %v152_v15  ;;  %1016 = vmatmul.mubr.f32.vlgmr.msra.gmra.mrb[0].mxu0 %v150_v46  ;;  %v1173_v46 = vpack.c.bf16 %v216_v58, %v209_v57  ;;  %v251_v57 = vand.u32 4294901760, %v1475_v24  ;;  %v258_v58 = vand.u32 4294901760, %v1478_v29 }
  0x47   :  { %1114 = vmatpush3.bf16.msra.mxu1 %v1113_v20  ;;  %1168 = vmatpush3.bf16.msra.mxu0 %v1167_v10  ;;  %v266_v20 = vsub.f32 %v1505_v61, %v265_v16 }
  0x48   :  { %1115 = vmatprep.subr.bf16.mxu1 %v1313_v0  ;;  %1169 = vmatprep.subr.bf16.mxu0 %v1313_v0  ;;  %v259_v10 = vsub.f32 %v1478_v29, %v258_v58 }
  0x49   :  { %913 = vmatprep.mubr.msk.f32.mxu1 %vm1314_vm0, %v1315_v1  ;;  %1018 = vmatprep.mubr.msk.f32.mxu0 %vm1314_vm0, %v1315_v1  ;;  %v267_v21 = vand.u32 4294901760, %v266_v20 }
  0x4a   :  { %914 = vmatmul.mubr.f32.gmra.mrb[2].mxu1 %v162_v44  ;;  %1019 = vmatmul.mubr.f32.gmra.mrb[2].mxu0 %v160_v9  ;;  %v252_v9 = vsub.f32 %v1475_v24, %v251_v57  ;;  %v260_v15 = vand.u32 4294901760, %v259_v10 }
  0x4b   :  { %1117 = vmatpush3.bf16.msra.mxu1 %v1116_v31  ;;  %1171 = vmatpush3.bf16.msra.mxu0 %v1170_v32 }
  0x4c   :  { %1118 = vmatprep.subr.bf16.mxu1 %v1313_v0  ;;  %1172 = vmatprep.subr.bf16.mxu0 %v1313_v0  ;;  %v253_v14 = vand.u32 4294901760, %v252_v9 }
  0x4d   :  { %916 = vmatprep.mubr.msk.f32.mxu1 %vm1314_vm0, %v1315_v1  ;;  %1021 = vmatprep.mubr.msk.f32.mxu0 %vm1314_vm0, %v1315_v1 }
  0x4e   :  { %917 = vmatmul.mubr.f32.gmra.mrb[4].mxu1 %v172_v47  ;;  %1022 = vmatmul.mubr.f32.gmra.mrb[4].mxu0 %v170_v18  ;;  %v1128_v17 = vpack.c.bf16 %v260_v15, %v253_v14  ;;  %v1182_v18 = vpack.c.bf16 %v258_v58, %v251_v57 }
  0x4f   :  { %1120 = vmatpush3.bf16.msra.mxu1 %v1119_v48  ;;  %1174 = vmatpush3.bf16.msra.mxu0 %v1173_v46 }
  0x50   :  { %1121 = vmatprep.subr.bf16.mxu1 %v1313_v0  ;;  %1175 = vmatprep.subr.bf16.mxu0 %v1313_v0 }
  0x51   :  { %945 = vmatprep.mubr.msk.f32.mxu1 %vm1314_vm0, %v1315_v1  ;;  %1050 = vmatprep.mubr.msk.f32.mxu0 %vm1314_vm0, %v1315_v1 }
  0x53   :  { %1123 = vmatpush3.bf16.msra.mxu1 %v1122_v3  ;;  %1177 = vmatpush3.bf16.msra.mxu0 %v1176_v62 }
  0x54   :  { %1124 = vmatprep.subr.bf16.mxu1 %v1313_v0  ;;  %1178 = vmatprep.subr.bf16.mxu0 %v1313_v0 }
  0x57   :  { %1126 = vmatpush3.bf16.msra.mxu1 %v1125_v11  ;;  %1180 = vmatpush3.bf16.msra.mxu0 %v1179_v53 }
  0x58   :  { %1127 = vmatprep.subr.bf16.mxu1 %v1313_v0  ;;  %1181 = vmatprep.subr.bf16.mxu0 %v1313_v0 }
  0x5b   :  { %1129 = vmatpush3.bf16.msra.mxu1 %v1128_v17  ;;  %1183 = vmatpush3.bf16.msra.mxu0 %v1182_v18 }
  0x5c   :  { %943 = vmatprep.subr.mxu1 %v1315_v1  ;;  %1048 = vmatprep.subr.mxu0 %v1315_v1 }
  0x5f   :  { %944 = vmatpush3.msra.mxu1 %v267_v21  ;;  %1049 = vmatpush3.msra.mxu0 %v265_v16 }
  0x60   :  { %1130 = vmatprep.subr.bf16.mxu1 %v1313_v0  ;;  %1184 = vmatprep.subr.bf16.mxu0 %v1313_v0 }
  0x61   :  { %946 = vmatmul.mubr.f32.vlgmr.msra.gmra.mrb[0].mxu1 %v1383_v25  ;;  %1051 = vmatmul.mubr.f32.vlgmr.msra.gmra.mrb[0].mxu0 %v1383_v25 }
  0x62   :  { %1132 = vmatpush3.bf16.msra.mxu1 %v1131_v22  ;;  %1186 = vmatpush3.bf16.msra.mxu0 %v1368_v12  ;;  %v1137_v12 = vpack.c.bf16 %v1416_v43, %v1414_v42 }
  0x63   :  { %1133 = vmatprep.subr.bf16.mxu1 %v1313_v0  ;;  %1187 = vmatprep.subr.bf16.mxu0 %v1313_v0 }
  0x64   :  { %948 = vmatprep.mubr.msk.f32.mxu1 %vm1314_vm0, %v1315_v1  ;;  %1053 = vmatprep.mubr.msk.f32.mxu0 %vm1314_vm0, %v1315_v1 }
  0x65   :  { %949 = vmatmul.mubr.f32.gmra.mrb[2].mxu1 %v1432_v54  ;;  %1054 = vmatmul.mubr.f32.gmra.mrb[2].mxu0 %v1432_v54 }
  0x66   :  { %1135 = vmatpush3.bf16.msra.mxu1 %v1134_v23  ;;  %1189 = vmatpush3.bf16.msra.mxu0 %v1372_v13  ;;  %v1140_v13 = vpack.c.bf16 %v1443_v60, %v1435_v56 }
  0x67   :  { %1136 = vmatprep.subr.bf16.mxu1 %v1313_v0  ;;  %1190 = vmatprep.subr.bf16.mxu0 %v1313_v0 }
  0x68   :  { %951 = vmatprep.mubr.msk.f32.mxu1 %vm1314_vm0, %v1315_v1  ;;  %1056 = vmatprep.mubr.msk.f32.mxu0 %vm1314_vm0, %v1315_v1 }
  0x69   :  { %952 = vmatmul.mubr.f32.gmra.mrb[4].mxu1 %v1441_v59  ;;  %1057 = vmatmul.mubr.f32.gmra.mrb[4].mxu0 %v1441_v59 }
  0x6a   :  { %1138 = vmatpush3.bf16.msra.mxu1 %v1137_v12  ;;  %1192 = vmatpush3.bf16.msra.mxu0 %v1378_v19  ;;  %v1146_v19 = vpack.c.bf16 %v1478_v29, %v1475_v24 }
  0x6b   :  { %1139 = vmatprep.subr.bf16.mxu1 %v1313_v0  ;;  %1193 = vmatprep.subr.bf16.mxu0 %v1313_v0 }
  0x6c   :  { %980 = vmatprep.mubr.msk.f32.mxu1 %vm1314_vm0, %v1315_v1  ;;  %1085 = vmatprep.mubr.msk.f32.mxu0 %vm1314_vm0, %v1315_v1 }
  0x6e   :  { %1141 = vmatpush3.bf16.msra.mxu1 %v1140_v13  ;;  %1195 = vmatpush3.bf16.msra.mxu0 %v1391_v28 }
  0x6f   :  { %1142 = vmatprep.subr.bf16.mxu1 %v1313_v0  ;;  %1196 = vmatprep.subr.bf16.mxu0 %v1313_v0 }
  0x72   :  { %1144 = vmatpush3.bf16.msra.mxu1 %v1143_v26  ;;  %1198 = vmatpush3.bf16.msra.mxu0 %v1410_v38 }
  0x73   :  { %1145 = vmatprep.subr.bf16.mxu1 %v1313_v0  ;;  %1199 = vmatprep.subr.bf16.mxu0 %v1313_v0 }
  0x76   :  { %1147 = vmatpush3.bf16.msra.mxu1 %v1146_v19  ;;  %1201 = vmatpush3.bf16.msra.mxu0 %v1428_v52 }
  0x77   :  { %978 = vmatprep.subr.mxu1 %v1315_v1  ;;  %1083 = vmatprep.subr.mxu0 %v1315_v1 }
  0x7a   :  { %979 = vmatpush3.msra.mxu1 %v1505_v61  ;;  %1084 = vmatpush3.msra.mxu0 %v1461_v8 }
  0x7b   :  { %981 = vmatmul.mubr.f32.vlgmr.msra.gmra.mrb[0].mxu1 %v1402_v34  ;;  %1086 = vmatmul.mubr.f32.vlgmr.msra.gmra.mrb[0].mxu0 %v1383_v25 }
  0x7c   :  { %983 = vmatprep.mubr.msk.f32.mxu1 %vm1314_vm0, %v1315_v1  ;;  %1088 = vmatprep.mubr.msk.f32.mxu0 %vm1314_vm0, %v1315_v1 }
  0x7f   :  { %984 = vmatmul.mubr.f32.gmra.mrb[2].mxu1 %v1448_v63  ;;  %1089 = vmatmul.mubr.f32.gmra.mrb[2].mxu0 %v1432_v54 }
  0x80   :  { %986 = vmatprep.mubr.msk.f32.mxu1 %vm1314_vm0, %v1315_v1  ;;  %1091 = vmatprep.mubr.msk.f32.mxu0 %vm1314_vm0, %v1315_v1 }
  0x83   :  { %987 = vmatmul.mubr.f32.gmra.mrb[4].mxu1 %v1452_v5  ;;  %1092 = vmatmul.mubr.f32.gmra.mrb[4].mxu0 %v1441_v59 }
 0x14e   :  { %v420_v0 = vpop.f32.mrb[0].mxu1  ;;  %v742_v25 = vpop.f32.mrb[0].mxu0 }
 0x14f   :  { %v1202_v27 = vadd.f32 %v742_v25, %v420_v0  ;;  %v982_v28 = vpop.f32.mrb[1].mxu1  ;;  %v1087_v33 = vpop.f32.mrb[1].mxu0 }
 0x151   :  { %758 = vst.msk [vmem:[#allocation7] sm:$0xff] %vm56_vm1, %v1202_v27  ;;  %763 = vst.msk [vmem:[#allocation7 + $0x18] sm:$0xff] %vm56_vm1, %v1202_v27 }
 0x152   :  { %767 = vst.msk [vmem:[#allocation7 + $0x30] sm:$0xff] %vm56_vm1, %v1202_v27  ;;  %v427_v34 = vpop.f32.mrb[2].mxu1  ;;  %v748_v35 = vpop.f32.mrb[2].mxu0 }
 0x153   :  { %v1203_v38 = vadd.f32 %v748_v35, %v427_v34  ;;  %v985_v42 = vpop.f32.mrb[3].mxu1  ;;  %v1090_v1 = vpop.f32.mrb[3].mxu0 }
 0x155   :  { %759 = vst.msk [vmem:[#allocation7 + $0x8] sm:$0xff] %vm56_vm1, %v1203_v38  ;;  %764 = vst.msk [vmem:[#allocation7 + $0x20] sm:$0xff] %vm56_vm1, %v1203_v38 }
 0x156   :  { %768 = vst.msk [vmem:[#allocation7 + $0x38] sm:$0xff] %vm56_vm1, %v1203_v38  ;;  %v434_v43 = vpop.f32.mrb[4].mxu1  ;;  %v754_v52 = vpop.f32.mrb[4].mxu0 }
 0x157   :  { %v1204_v54 = vadd.f32 %v754_v52, %v434_v43  ;;  %v988_v56 = vpop.f32.mrb[5].mxu1  ;;  %v1093_v59 = vpop.f32.mrb[5].mxu0 }
 0x159   :  { %761 = vst.msk [vmem:[#allocation7 + $0x10] sm:$0xf] %vm760_vm3, %v1204_v54  ;;  %765 = vst.msk [vmem:[#allocation7 + $0x28] sm:$0xf] %vm760_vm3, %v1204_v54 }
 0x15a   :  { %769 = vst.msk [vmem:[#allocation7 + $0x40] sm:$0xf] %vm760_vm3, %v1204_v54 }
 0x15b   :  { %1292 = shalt.err (!%p1289_p6)
}
 0x15c   :  { %s1293_s10 = scalar_lea.hbm %s1612_s2, 1152 }
 0x15d   :  { %p1294_p7 = scmp.ne.s32.totalorder %s1612_s2, %s1293_s10  ;;  %p1297_p8 = scmp.lt.u32.totalorder %s1293_s10, %s1612_s2 }
 0x15f   :  { %p1299_p9 = pnand %p1297_p8, %p1294_p7 }
 0x161   :  { %1302 = shalt.err (!%p1299_p9)
}
 0x162   :  { %781 = dma.vmem_to_hbm [thread:$0]  %s776_s6, 1152, %s1612_s2, [#allocation4], %s1310_s19, %s1310_s19, %s1311_s20  }
 0x163   :  { %1307 = dma.done.wait [#allocation4], 1152  }
 0x164   :  { %1308 = vsyncadd [#allocation4], 4294966144 }
 0x165   :  { %785 = vsyncpa [#allocation3], 1 }
 0x166   :  { %786 = vsyncpa [#allocation6], 1 }
 0x167   :  { %787 = vsyncpa [#allocation4], 1 }

</bundles_post_ra>
